<compile_context>
chip_gen: v7x
topology: tpu7x:2x2x1
jax: 0.10.0
libtpu: 0.0.40
codegen_flags: <defaults>
</compile_context>

<pallas_src>
import math
import jax
import jax.numpy as jnp
from jax.experimental import pallas as pl
from jax.experimental.pallas import tpu as pltpu

# ---- module hyper-parameters (SphereProduct.__init__ defaults) --------------
M = 4                    # margin -> cos(m*theta) Chebyshev poly: 8x^4 - 8x^2 + 1
BASE = 1000.0
GAMMA = 0.12
POWER = 1
LAMBDA_MIN = 5.0
ITER = 1                 # forward() does self.iter += 1 before using it
LAMB = max(LAMBDA_MIN, BASE * (1.0 + GAMMA * ITER) ** (-POWER))
INV_ONE_PLUS_LAMB = 1.0 / (1.0 + LAMB)   # compile-time constant multiplier
PI_TORCH = 3.14159265    # the constant used in the reference module
EPS = 1e-12              # F.normalize default eps

# Thresholds cos(j*pi/m):  k = floor(m*acos(c)/pi) == #{ j in 1..m : c <= cos(j*pi/m) }
# (acos is monotone decreasing, so the floor is computed by counting thresholds;
#  avoids an in-kernel acos lowering.)
K_THRESHOLDS = tuple(math.cos(j * PI_TORCH / M) for j in range(1, M + 1))


def sphere_product_kernel(xn_ref, xnorm_ref, wt_ref, lbl_ref, o_ref):
    x_n = xn_ref[...]                                 # (TB, D)   pre-normalized x
    x_norm = xnorm_ref[...]                           # (TB, 1)   ||x|| (raw)
    w_t = wt_ref[...]                                 # (D, TC)   normalized W, transposed
    lbl = lbl_ref[...]                                # (TB, 1)   i32

    # cos_theta = x_n @ w_n.T : canonical MXU layout, contraction ((1,), (0,)).
    cos_theta = jax.lax.dot_general(
        x_n, w_t,
        dimension_numbers=(((1,), (0,)), ((), ())),
        preferred_element_type=jnp.float32)
    cos_theta = jnp.clip(cos_theta, -1.0, 1.0)        # (TB, TC)

    # one_hot.scatter_(1, label, 1) for THIS class tile (iota offset by tile start).
    tb, tc = cos_theta.shape
    col = jax.lax.broadcasted_iota(jnp.int32, (tb, tc), 1) + pl.program_id(1) * tc
    mask = col == lbl                                  # (TB, TC) bool

    # Margin math only on the label column; jnp.where keeps ragged-edge garbage
    # (classes >= C or batch rows >= B) out of the reduction.
    cos_l = jnp.sum(jnp.where(mask, cos_theta, 0.0), axis=-1, keepdims=True)  # (TB, 1)
    c2 = cos_l * cos_l
    cos_m = 8.0 * c2 * c2 - 8.0 * c2 + 1.0             # cos(4*theta)
    k = jnp.zeros_like(cos_l)
    for thr in K_THRESHOLDS:                           # k = floor(m*acos/pi)
        k = k + (cos_l <= thr).astype(jnp.float32)
    sign = 1.0 - 2.0 * jnp.mod(k, 2.0)                 # (-1)^k
    phi_l = sign * cos_m - 2.0 * k                     # (TB, 1)

    delta = (phi_l - cos_l) * INV_ONE_PLUS_LAMB        # (TB, 1)
    # output = (one_hot*(phi - cos)/(1+lamb) + cos_theta) * ||x||
    o_ref[...] = jnp.where(mask, cos_theta + delta, cos_theta) * x_norm


def _round_up(n, m):
    return (n + m - 1) // m * m


def sphere_product(x, weight, label, *, tile_b=None, tile_c=512,
                   vmem_limit_bytes=32 * 1024 * 1024):
    x = x.astype(jnp.float32)
    weight = weight.astype(jnp.float32)
    B, D = x.shape
    C, Dw = weight.shape
    assert D == Dw

    # Hoist F.normalize(input) and F.normalize(weight) out of the kernel:
    # one XLA pass each per call, instead of per grid tile.  The weight is also
    # transposed to (D, C) so the streamed block is lane-dense along classes and
    # feeds the MXU without any in-kernel relayout.
    x_norm = jnp.sqrt(jnp.sum(x * x, axis=-1, keepdims=True))            # (B, 1)
    x_n = x / jnp.maximum(x_norm, EPS)
    w_norm = jnp.sqrt(jnp.sum(weight * weight, axis=-1, keepdims=True))  # (C, 1)
    w_t = (weight / jnp.maximum(w_norm, EPS)).T                          # (D, C)
    # TODO(synk): on v5e, streaming w_t in bf16 (f32 accumulate) halves HBM bytes
    # but does not meet the 1e-5 test tolerance; left in f32 here.

    lbl = label.reshape(-1, 1).astype(jnp.int32)                         # (B, 1)
    # TODO(synk): label stays as a tiny (TILE_B,1) VMEM block; the SMEM scalar
    # path would need per-row scalar reads and buys nothing at these sizes.

    # Tile sizing: large batch tiles minimize weight re-reads (HBM traffic is
    # ~(B/tile_b)*C*D*4 bytes of W streaming); tile_c multiple of 128 (prefer
    # 256+) for unmasked lane-dense stores.  Auto-shrink to the scoped VMEM
    # budget (double-buffered inputs + output tile).
    if tile_b is None:
        tile_b = min(_round_up(B, 8), 512)
    tile_b = min(_round_up(tile_b, 8), _round_up(B, 8))
    tile_c = min(_round_up(tile_c, 128), _round_up(C, 128))

    def vmem_bytes(tb, tc):
        # 2x buffered: x_n (tb*D), x_norm (tb), w_t (D*tc), label (tb), out (tb*tc); f32
        return 2 * 4 * (tb * D + tb + D * tc + tb + tb * tc)

    while vmem_bytes(tile_b, tile_c) > 0.8 * vmem_limit_bytes and tile_c > 128:
        tile_c = _round_up(tile_c // 2, 128)
    while vmem_bytes(tile_b, tile_c) > 0.8 * vmem_limit_bytes and tile_b > 8:
        tile_b = _round_up(tile_b // 2, 8)

    # Batch outer, classes inner: x tile stays resident across the inner class
    # loop, W tiles stream.  Both axes parallel (megacore / v7x dual-TC); for
    # v7x make sure at least one axis has >= 2 blocks at real shapes.
    grid = (pl.cdiv(B, tile_b), pl.cdiv(C, tile_c))

    out = pl.pallas_call(
        sphere_product_kernel,
        out_shape=jax.ShapeDtypeStruct((B, C), jnp.float32),
        grid=grid,
        in_specs=[
            pl.BlockSpec((tile_b, D), lambda i, j: (i, 0)),    # x_n: resident per batch tile
            pl.BlockSpec((tile_b, 1), lambda i, j: (i, 0)),    # ||x||
            pl.BlockSpec((D, tile_c), lambda i, j: (0, j)),    # w_n^T: streamed per class tile
            pl.BlockSpec((tile_b, 1), lambda i, j: (i, 0)),    # label
        ],
        out_specs=pl.BlockSpec((tile_b, tile_c), lambda i, j: (i, j)),
        compiler_params=pltpu.CompilerParams(
            dimension_semantics=("parallel", "parallel"),
            vmem_limit_bytes=vmem_limit_bytes),
    )(x_n, x_norm, w_t, lbl)

    return out   # (B, C); ragged edges handled by Pallas partial writes


def sphere_product_ref(x, weight, label):
    """Pure-JAX reference mirroring the PyTorch forward (iter=1)."""
    x_n = x / jnp.maximum(jnp.linalg.norm(x, axis=1, keepdims=True), EPS)
    w_n = weight / jnp.maximum(jnp.linalg.norm(weight, axis=1, keepdims=True), EPS)
    cos_theta = jnp.clip(x_n @ w_n.T, -1.0, 1.0)
    cos_m_theta = 8.0 * cos_theta ** 4 - 8.0 * cos_theta ** 2 + 1.0
    theta = jnp.arccos(cos_theta)
    k = jnp.floor(M * theta / PI_TORCH)
    phi_theta = ((-1.0) ** k) * cos_m_theta - 2.0 * k
    norm_feat = jnp.linalg.norm(x, axis=1, keepdims=True)
    one_hot = jax.nn.one_hot(label, cos_theta.shape[1], dtype=jnp.float32)
    out = one_hot * (phi_theta - cos_theta) / (1.0 + LAMB) + cos_theta
    return out * norm_feat


if __name__ == "__main__":
    # Small demo shapes; C=200 is deliberately not a multiple of 128 to exercise
    # the ragged (un-padded) class edge.
    B, IN_FEATURES, OUT_FEATURES = 16, 32, 200

    key = jax.random.PRNGKey(0)
    kx, kl, kw = jax.random.split(key, 3)

    x = jax.random.normal(kx, (B, IN_FEATURES), dtype=jnp.float32)
    label = jax.random.randint(kl, (B,), 0, OUT_FEATURES, dtype=jnp.int32)

    # xavier_uniform init for weight (out_features, in_features)
    bound = math.sqrt(6.0 / (IN_FEATURES + OUT_FEATURES))
    weight = jax.random.uniform(
        kw, (OUT_FEATURES, IN_FEATURES), dtype=jnp.float32,
        minval=-bound, maxval=bound)

    ref = sphere_product_ref(x, weight, label)

    # 1) small explicit tiles -> real (2, 2) grid with a ragged class edge
    out_small = sphere_product(x, weight, label, tile_b=8, tile_c=128)
    out_small = jax.block_until_ready(out_small)
    assert out_small.shape == (B, OUT_FEATURES)
    assert jnp.allclose(out_small, ref, atol=1e-5, rtol=1e-5), "mismatch (small tiles)"

    # 2) default (large) tiles -> single resident x tile, ragged class block
    out_big = sphere_product(x, weight, label)
    out_big = jax.block_until_ready(out_big)
    assert out_big.shape == (B, OUT_FEATURES)
    assert jnp.allclose(out_big, ref, atol=1e-5, rtol=1e-5), "mismatch (default tiles)"

    print("KERNEL_OK")
</pallas_src>

<mosaic_0001>
module attributes {stable_mosaic.version = 11 : i64} {
  func.func @sphere_product_kernel(%arg0: i32, %arg1: i32, %arg2: memref<8x32xf32, #tpu.memory_space<vmem>>, %arg3: memref<8x1xf32, #tpu.memory_space<vmem>>, %arg4: memref<32x128xf32, #tpu.memory_space<vmem>>, %arg5: memref<8x1xi32, #tpu.memory_space<vmem>>, %arg6: memref<8x128xf32, #tpu.memory_space<vmem>>) attributes {dimension_semantics = [#tpu.dimension_semantics<parallel>, #tpu.dimension_semantics<parallel>], iteration_bounds = array<i64: 2, 2>, scalar_prefetch = 0 : i64, scratch_operands = 0 : i64, tpu.core_type = #tpu.core_type<tc>, window_params = [{transform_indices = @transform_0, window_bounds = array<i64: 8, 32>}, {transform_indices = @transform_1, window_bounds = array<i64: 8, 1>}, {transform_indices = @transform_2, window_bounds = array<i64: 32, 128>}, {transform_indices = @transform_3, window_bounds = array<i64: 8, 1>}, {transform_indices = @transform_4, window_bounds = array<i64: 8, 128>}]} {
    %c0 = arith.constant 0 : index
    %c0_0 = arith.constant 0 : index
    %0 = vector.load %arg2[%c0, %c0_0] : memref<8x32xf32, #tpu.memory_space<vmem>>, vector<8x32xf32>
    %c0_1 = arith.constant 0 : index
    %c0_2 = arith.constant 0 : index
    %1 = vector.load %arg3[%c0_1, %c0_2] : memref<8x1xf32, #tpu.memory_space<vmem>>, vector<8x1xf32>
    %c0_3 = arith.constant 0 : index
    %c0_4 = arith.constant 0 : index
    %2 = vector.load %arg4[%c0_3, %c0_4] : memref<32x128xf32, #tpu.memory_space<vmem>>, vector<32x128xf32>
    %c0_5 = arith.constant 0 : index
    %c0_6 = arith.constant 0 : index
    %3 = vector.load %arg5[%c0_5, %c0_6] : memref<8x1xi32, #tpu.memory_space<vmem>>, vector<8x1xi32>
    %cst = arith.constant dense<0.000000e+00> : vector<8x128xf32>
    %4 = tpu.matmul %0, %2, %cst {dimension_numbers = #tpu.dot_dimension_numbers<[1], [0], [0], [1], [0, 0, 1, 1], [], []>} : vector<8x32xf32>, vector<32x128xf32>, vector<8x128xf32> -> vector<8x128xf32>
    %cst_7 = arith.constant -1.000000e+00 : f32
    %cst_8 = arith.constant 1.000000e+00 : f32
    %5 = vector.broadcast %cst_7 : f32 to vector<8x128xf32>
    %6 = arith.maximumf %5, %4 : vector<8x128xf32>
    %7 = vector.broadcast %cst_8 : f32 to vector<8x128xf32>
    %8 = arith.minimumf %7, %6 : vector<8x128xf32>
    %9 = tpu.iota {dimensions = array<i32: 1>} : vector<8x128xi32>
    %c128_i32 = arith.constant 128 : i32
    %10 = arith.muli %arg1, %c128_i32 : i32
    %11 = vector.broadcast %10 : i32 to vector<8x128xi32>
    %12 = arith.addi %9, %11 : vector<8x128xi32>
    %13 = vector.broadcast %3 : vector<8x1xi32> to vector<8x128xi32>
    %14 = arith.cmpi eq, %12, %13 : vector<8x128xi32>
    %cst_9 = arith.constant 0.000000e+00 : f32
    %15 = vector.broadcast %cst_9 : f32 to vector<8x128xf32>
    %16 = arith.select %14, %8, %15 : vector<8x128xi1>, vector<8x128xf32>
    %cst_10 = arith.constant dense<0.000000e+00> : vector<8xf32>
    %17 = vector.multi_reduction <add>, %16, %cst_10 [1] : vector<8x128xf32> to vector<8xf32>
    %18 = vector.shape_cast %17 : vector<8xf32> to vector<8x1xf32>
    %19 = arith.mulf %18, %18 : vector<8x1xf32>
    %cst_11 = arith.constant 8.000000e+00 : f32
    %20 = vector.broadcast %cst_11 : f32 to vector<8x1xf32>
    %21 = arith.mulf %20, %19 : vector<8x1xf32>
    %22 = arith.mulf %21, %19 : vector<8x1xf32>
    %cst_12 = arith.constant 8.000000e+00 : f32
    %23 = vector.broadcast %cst_12 : f32 to vector<8x1xf32>
    %24 = arith.mulf %23, %19 : vector<8x1xf32>
    %25 = arith.subf %22, %24 : vector<8x1xf32>
    %cst_13 = arith.constant 1.000000e+00 : f32
    %26 = vector.broadcast %cst_13 : f32 to vector<8x1xf32>
    %27 = arith.addf %25, %26 : vector<8x1xf32>
    %cst_14 = arith.constant 0.000000e+00 : f32
    %28 = vector.broadcast %cst_14 : f32 to vector<8x1xf32>
    %cst_15 = arith.constant 0.707106769 : f32
    %29 = vector.broadcast %cst_15 : f32 to vector<8x1xf32>
    %30 = arith.cmpf ole, %18, %29 : vector<8x1xf32>
    %31 = arith.extui %30 : vector<8x1xi1> to vector<8x1xi32>
    %32 = arith.sitofp %31 : vector<8x1xi32> to vector<8x1xf32>
    %33 = arith.addf %28, %32 : vector<8x1xf32>
    %cst_16 = arith.constant 1.79489656E-9 : f32
    %34 = vector.broadcast %cst_16 : f32 to vector<8x1xf32>
    %35 = arith.cmpf ole, %18, %34 : vector<8x1xf32>
    %36 = arith.extui %35 : vector<8x1xi1> to vector<8x1xi32>
    %37 = arith.sitofp %36 : vector<8x1xi32> to vector<8x1xf32>
    %38 = arith.addf %33, %37 : vector<8x1xf32>
    %cst_17 = arith.constant -0.707106769 : f32
    %39 = vector.broadcast %cst_17 : f32 to vector<8x1xf32>
    %40 = arith.cmpf ole, %18, %39 : vector<8x1xf32>
    %41 = arith.extui %40 : vector<8x1xi1> to vector<8x1xi32>
    %42 = arith.sitofp %41 : vector<8x1xi32> to vector<8x1xf32>
    %43 = arith.addf %38, %42 : vector<8x1xf32>
    %cst_18 = arith.constant -1.000000e+00 : f32
    %44 = vector.broadcast %cst_18 : f32 to vector<8x1xf32>
    %45 = arith.cmpf ole, %18, %44 : vector<8x1xf32>
    %46 = arith.extui %45 : vector<8x1xi1> to vector<8x1xi32>
    %47 = arith.sitofp %46 : vector<8x1xi32> to vector<8x1xf32>
    %48 = arith.addf %43, %47 : vector<8x1xf32>
    %cst_19 = arith.constant 2.000000e+00 : f32
    %49 = vector.broadcast %cst_19 : f32 to vector<8x1xf32>
    %50 = arith.remf %48, %49 : vector<8x1xf32>
    %cst_20 = arith.constant 0.000000e+00 : f32
    %51 = vector.broadcast %cst_20 : f32 to vector<8x1xf32>
    %52 = arith.cmpf one, %50, %51 : vector<8x1xf32>
    %cst_21 = arith.constant 0.000000e+00 : f32
    %53 = vector.broadcast %cst_21 : f32 to vector<8x1xf32>
    %54 = arith.cmpf olt, %50, %53 : vector<8x1xf32>
    %cst_22 = arith.constant 0.000000e+00 : f32
    %55 = arith.cmpf olt, %cst_19, %cst_22 : f32
    %56 = vector.broadcast %55 : i1 to vector<8x1xi1>
    %57 = vector.broadcast %56 : vector<8x1xi1> to vector<8x1xi1>
    %58 = arith.xori %54, %57 : vector<8x1xi1>
    %59 = arith.andi %58, %52 : vector<8x1xi1>
    %60 = vector.broadcast %cst_19 : f32 to vector<8x1xf32>
    %61 = arith.addf %50, %60 : vector<8x1xf32>
    %62 = arith.select %59, %61, %50 : vector<8x1xi1>, vector<8x1xf32>
    %cst_23 = arith.constant 2.000000e+00 : f32
    %63 = vector.broadcast %cst_23 : f32 to vector<8x1xf32>
    %64 = arith.mulf %63, %62 : vector<8x1xf32>
    %cst_24 = arith.constant 1.000000e+00 : f32
    %65 = vector.broadcast %cst_24 : f32 to vector<8x1xf32>
    %66 = arith.subf %65, %64 : vector<8x1xf32>
    %67 = arith.mulf %66, %27 : vector<8x1xf32>
    %cst_25 = arith.constant 2.000000e+00 : f32
    %68 = vector.broadcast %cst_25 : f32 to vector<8x1xf32>
    %69 = arith.mulf %68, %48 : vector<8x1xf32>
    %70 = arith.subf %67, %69 : vector<8x1xf32>
    %71 = arith.subf %70, %18 : vector<8x1xf32>
    %cst_26 = arith.constant 0.00111874705 : f32
    %72 = vector.broadcast %cst_26 : f32 to vector<8x1xf32>
    %73 = arith.mulf %71, %72 : vector<8x1xf32>
    %74 = vector.broadcast %73 : vector<8x1xf32> to vector<8x128xf32>
    %75 = arith.addf %8, %74 : vector<8x128xf32>
    %76 = arith.select %14, %75, %8 : vector<8x128xi1>, vector<8x128xf32>
    %77 = vector.broadcast %1 : vector<8x1xf32> to vector<8x128xf32>
    %78 = arith.mulf %76, %77 : vector<8x128xf32>
    %c0_27 = arith.constant 0 : index
    %c0_28 = arith.constant 0 : index
    %79 = vector.load %arg6[%c0_27, %c0_28] : memref<8x128xf32, #tpu.memory_space<vmem>>, vector<8x128xf32>
    tpu.vector_store %arg6[%c0_27, %c0_28], %78 {strides = array<i32>} : memref<8x128xf32, #tpu.memory_space<vmem>>, vector<8x128xf32>,
    return
  }
  func.func @transform_0(%arg0: i32, %arg1: i32) -> (i32, i32) {
    %c0_i32 = arith.constant 0 : i32
    %c0_i32_0 = arith.constant 0 : i32
    return %arg0, %c0_i32 : i32, i32
  }
  func.func @transform_1(%arg0: i32, %arg1: i32) -> (i32, i32) {
    %c0_i32 = arith.constant 0 : i32
    %c0_i32_0 = arith.constant 0 : i32
    return %arg0, %c0_i32 : i32, i32
  }
  func.func @transform_2(%arg0: i32, %arg1: i32) -> (i32, i32) {
    %c0_i32 = arith.constant 0 : i32
    %c0_i32_0 = arith.constant 0 : i32
    return %c0_i32, %arg1 : i32, i32
  }
  func.func @transform_3(%arg0: i32, %arg1: i32) -> (i32, i32) {
    %c0_i32 = arith.constant 0 : i32
    %c0_i32_0 = arith.constant 0 : i32
    return %arg0, %c0_i32 : i32, i32
  }
  func.func @transform_4(%arg0: i32, %arg1: i32) -> (i32, i32) {
    %c0_i32 = arith.constant 0 : i32
    return %arg0, %arg1 : i32, i32
  }
}

</mosaic_0001>

<bundles_post_ra>
// kernel: tpu_custom_call.1
= control target key start
LH: loop header
LB: loop body
LE: loop exit
PB: predicated region body
PF: predicated region fallthrough
CT: control target
= control target key end

     0   :  { %9 = vsyncpa [#allocation3], 0  ;;  %s1139_s0 = inlined_call_operand.vmem [shape: f32[16,32], index: 0, kind: input, shape index: {}]   ;;  %s1140_s1 = inlined_call_operand.vmem [shape: f32[16,1], index: 1, kind: input, shape index: {}]   ;;  %s1141_s2 = inlined_call_operand.hbm [shape: f32[32,200], index: 2, kind: input, shape index: {}]   ;;  %s1142_s3 = inlined_call_operand.vmem [shape: s32[16,1], index: 3, kind: input, shape index: {}]   ;;  %s1143_s4 = inlined_call_operand.hbm [shape: f32[16,200], index: 4, kind: output, shape index: {}]  }
   0x1   :  { %11 = vsyncpa [#allocation3 + $0x1], 0 }
   0x2   :  { %12 = vsyncpa [#allocation4], 0 }
   0x3   :  { %14 = vsyncpa [#allocation4 + $0x1], 0  ;;  %s908_s15 = smov 0   ;;  %s910_s16 = smov 0  }
   0x4   :  { %s912_s17 = smov 0   ;;  %s914_s18 = smov 0  }
   0x5   :  { %s916_s19 = smov 0   ;;  %s918_s20 = smov 0  }
   0x6   :  { %s920_s21 = smov 0   ;;  %s922_s22 = smov 0  }
   0x7   :  { %s924_s23 = smov 0   ;;  %s926_s24 = smov 0  }
   0x8   :  { %s928_s25 = smov 0  }
   0x9 LB: > { %s563_s26 = sadd.s32 4294967295, %s872_s25   ;;  %s564_s27 = sadd.s32 4294967294, %s872_s25   ;;  %s872_s25 = sphi %s928_s25, %s20_s25   ;;  %s868_s24 = sphi %s926_s24, %s1167_s24   ;;  %s864_s23 = sphi %s924_s23, %s1166_s23   ;;  %s860_s22 = sphi %s922_s22, %s1165_s22   ;;  %s856_s21 = sphi %s920_s21, %s1164_s21   ;;  %s852_s20 = sphi %s918_s20, %s1163_s20   ;;  %s848_s19 = sphi %s916_s19, %s1162_s19   ;;  %s844_s18 = sphi %s914_s18, %s1161_s18   ;;  %s840_s17 = sphi %s912_s17, %s1160_s17   ;;  %s836_s16 = sphi %s910_s16, %s1159_s16   ;;  %s832_s15 = sphi %s908_s15, %s1158_s15  }
   0xa   : > { %s29_s28 = sadd.s32 1, %s864_s23  ;;  %s32_s29 = sadd.s32 1, %s868_s24 }
   0xb   : > { %p30_p0 = scmp.ge.s32.totalorder %s29_s28, 2  ;;  %s91_s30 = sadd.s32 1, %s852_s20 }
   0xc   : > { %p98_p1 = scmp.ne.s32.totalorder %s852_s20, %s848_s19  ;;  %p99_p2 = scmp.eq.s32.totalorder %s872_s25, 0 }
   0xd   : > { %s1169_s28 = smov (%p30_p0, %s29_s28), 0  ;;  %s1171_s29 = smov (!%p30_p0, %s32_s29), %s868_s24 }
   0xe   : > { %1147 = sst [smem:[#allocation8_spill]] %s1169_s28  ;;  %s88_s5 = ssub.s32 %s864_s23, %s1169_s28 }
   0xf   : > { %p974_p3 = por %p99_p2, %p98_p1  ;;  %p34_p4 = scmp.ge.s32.totalorder %s1171_s29, 2 }
  0x10   : > { %p89_p5 = scmp.eq.s32.totalorder %s88_s5, 0  ;;  %p104_p6 = scmp.ne.s32.totalorder %s848_s19, %s844_s18 }
  0x11   : > { %p105_p7 = scmp.eq.s32.totalorder %s563_s26, 0  ;;  %s1173_s29 = smov (%p34_p4, %s1171_s29), 0 }
  0x12   : > { %1149 = sst [smem:[#allocation9_spill]] %s1173_s29  ;;  %s140_s9 = ssub.s32 %s868_s24, %s1173_s29 }
  0x13   : > { %s982_s7 = scalar_select %p89_p5, %s852_s20, %s91_s30  }
  0x14   : > { %p984_p8 = por %p105_p7, %p104_p6  ;;  %s142_s10 = sor.u32 %s140_s9, %s88_s5 }
  0x15   : > { %s145_s11 = sadd.s32 1, %s840_s17  ;;  %p143_p9 = scmp.eq.s32.totalorder %s142_s10, 0 }
  0x16   : > { %p155_p10 = scmp.ne.s32.totalorder %s840_s17, %s836_s16  ;;  %p156_p11 = scmp.eq.s32.totalorder %s563_s26, 3 }
  0x17   : > { %p161_p12 = scmp.ne.s32.totalorder %s836_s16, %s832_s15  ;;  %p162_p0 = scmp.eq.s32.totalorder %s564_s27, 3 }
  0x18   : > { %s996_s12 = scalar_select %p143_p9, %s840_s17, %s145_s11  }
  0x19   : > { %p998_p13 = por %p156_p11, %p155_p10  ;;  %p621_p1 = scmp.lt.s32.totalorder %s872_s25, 4 }
  0x1a   : > { %p1003_p2 = por %p162_p0, %p161_p12  ;;  %s196_s18 = sand.u32 1, %s852_s20  }
  0x1b   : > { %s1151_s13 = scalar_select %p998_p13, 1, 0 }
  0x1c   : > { %s1152_s14 = scalar_select %p1003_p2, 1, 0 }
  0x1d   : > { %s567_s30 = sshll.u32 %s196_s18, 5  ;;  %s568_s5 = sshll.u32 %s864_s23, 7 }
  0x1e   : > { %s1012_s26 = scalar_lea.hbm %s1141_s2, %s568_s5  ;;  %s200_s11 = scalar_lea.vmem [#allocation2], %s567_s30 }
  0x1f   : > { %s206_s29 = sshll.u32 %s200_s11, 4  ;;  %p1018_p4 = pnand %p621_p1, %p974_p3  ;;  %s1014_s29 = int_to_ptr.vmem [resolvable:$true] %s206_s29 }
  0x20   : > { %s1022_s28 = scalar_lea.sflag [#allocation3], %s196_s18  ;;  %s720_s9 = scalar_lea.hbm %s1012_s26, 512 }
  0x21   : > { %p721_p5 = scmp.ne.s32.totalorder %s1012_s26, %s720_s9  ;;  %p722_p6 = pneg %p1018_p4 }
  0x22   : > { %s725_s6 = scalar_lea.hbm %s1141_s2, 1024  ;;  %p726_p3 = scmp.lt.u32.totalorder %s1012_s26, %s1141_s2 }
  0x23   : > { %p723_p7 = pnand %p722_p6, %p721_p5  ;;  %p727_p10 = scmp.lt.u32.totalorder %s725_s6, %s720_s9 }
  0x24   : > { %p729_p12 = scmp.lt.u32.totalorder %s720_s9, %s1012_s26 }
  0x25   : > { %p724_p9 = pneg %p723_p7  ;;  %p728_p11 = por %p727_p10, %p726_p3 }
  0x27   : > { %p730_p0 = por %p729_p12, %p728_p11 }
  0x29   : > { %p731_p1 = pnand %p730_p0, %p724_p9 }
  0x2b   : > { %734 = shalt.err (!%p731_p1)
}
  0x2c   : > { %s735_s18 = scalar_lea.vmem %s1014_s29, 512  ;;  %s874_s30 = smov [#allocation2]  }
  0x2d   : > { %p736_p5 = scmp.ne.s32.totalorder %s1014_s29, %s735_s18  ;;  %s740_s5 = sshll.u32 %s874_s30, 4  ;;  %s741_s5 = int_to_ptr.vmem [resolvable:$false] %s740_s5 }
  0x2e   : > { %s742_s10 = scalar_lea.vmem %s741_s5, 1024  ;;  %p743_p13 = scmp.lt.s32.totalorder %s1014_s29, %s741_s5 }
  0x2f   : > { %p738_p7 = pnand %p736_p5, %p722_p6  ;;  %p744_p3 = scmp.lt.s32.totalorder %s742_s10, %s735_s18 }
  0x31   : > { %p739_p2 = pneg %p738_p7  ;;  %p745_p10 = por %p744_p3, %p743_p13 }
  0x33   : > { %p746_p11 = pnand %p745_p10, %p739_p2 }
  0x35   : > { %749 = shalt.err (!%p746_p11)
}
  0x36   : > { %s875_s9 = smov 256   ;;  %s876_s6 = smov 128  }
  0x37   : > { %s877_s11 = smov 8   ;;  %p569_p6 = scmp.ge.s32.totalorder %s872_s25, 1 }
  0x38   : > { %616 = dma.hbm_to_vmem [thread:$0]  (!%p1018_p4), %s1012_s26, 512, %s1014_s29, %s1022_s28, %s875_s9, %s876_s6, %s877_s11  }
  0x39   : > { %p221_p9 = scmp.lt.s32.totalorder %s872_s25, 5 }
  0x3b   : > { %p222_p12 = pnand %p569_p6, %p221_p9 }
  0x3c   : > { %s227_s18 = sand.u32 (!%p222_p12), 1, %s848_s19  }
  0x3d   : > { %225 = sbr.rel (%p222_p12) target bundleno = 495 (0x1ef), region = 36  ;;  %s570_s30 = sshll.u32 (!%p222_p12), %s227_s18, 5 }
  0x3e   : > { %s228_s5 = scalar_lea.sflag (!%p222_p12), [#allocation3], %s227_s18  ;;  %s231_s10 = scalar_lea.vmem (!%p222_p12), [#allocation2], %s570_s30 }
  0x44   : > { %823 = dma.done.wait (%p984_p8), %s228_s5, 512  }
  0x45   : > { %825 = vsyncadd (%p984_p8), %s228_s5, 4294966784  ;;  %p268_p13 = scmp.lt.s32.totalorder %s860_s22, 1  ;;  %v878_v0 = vmov 0.0|0.0   ;;  %vm879_vm0 = vmmov 0   ;;  %v880_v1 = vmov 0.0   ;;  %v881_v2 = vmov 0  }
  0x46   : > { %603 = vmatprep.subr.bf16.mxu0 %v878_v0  ;;  %600 = vmatprep.mubr.msk.f32.mxu0 %vm879_vm0, %v880_v1  ;;  %v282_v3 = vld [vmem:[%s231_s10] sm:$0xff]  ;;  %v283_v4 = vld [vmem:[%s231_s10 + $0x8] sm:$0xff]  ;;  %v284_v5 = vld [vmem:[%s231_s10 + $0x10] sm:$0xff]  ;;  %vm287_vm1 = vcmask 261120   ;;  %v363_v12 = vlaneseq  ;;  %s583_s26 = sshll.u32 %s860_s22, 1  ;;  %p1154_p2 = scmp.ne.s32.totalorder %s1151_s13, 0 }
  0x47   : > { %s269_s28 = scalar_select %p268_p13, %s860_s22, 1  ;;  %718 = vset.pattern.permute.xlu0 %v881_v2  ;;  %719 = vset.pattern.permute.xlu1 %v881_v2  ;;  %v604_v6 = vpack.c.bf16 %v283_v4, %v282_v3  ;;  %v285_v7 = vld [vmem:[%s231_s10 + $0x18] sm:$0xff] }
  0x48   : > { %v607_v9 = vpack.c.bf16 %v285_v7, %v284_v5  ;;  %s577_s10 = sshll.u32 %s856_s21, 7  ;;  %v364_v13 = vand.u32 127, %v363_v12  ;;  %s440_s27 = sadd.s32 %s856_s21, %s583_s26 }
  0x49   : > { %s572_s29 = sshll.u32 %s269_s28, 3  ;;  %605 = vmatpush3.bf16.msra.mxu0 %v604_v6  ;;  %v366_v14 = vstv %s577_s10  ;;  %s265_s28 = sand.u32 1, %s836_s16  }
  0x4a   : > { %s279_s9 = scalar_lea.vmem %s1142_s3, %s572_s29  ;;  %606 = vmatprep.subr.bf16.mxu0 %v878_v0  ;;  %s271_s11 = scalar_lea.vmem %s1139_s0, %s572_s29  ;;  %v367_v15 = vadd.s32 %v366_v14, %v364_v13 }
  0x4b   : > { %v286_v8 = vld [vmem:[%s279_s9] sm:$0xff]  ;;  %s275_s5 = scalar_lea.vmem %s1140_s1, %s572_s29  ;;  %s571_s29 = sshll.u32 %s265_s28, 3 }
  0x4c   : > { %369 = vperm.xlu0 %718, %v286_v8   ;;  %v280_v10 = vld [vmem:[%s271_s11] sm:$0xff]  ;;  %s584_s9 = sshll.u32 %s440_s27, 7  ;;  %s267_s8 = scalar_lea.vmem [#allocation5], %s571_s29 }
  0x4d   : > { %608 = vmatpush3.bf16.msra.mxu0 %v607_v9  ;;  %v281_v11 = vld [vmem:[%s275_s5] sm:$0xff]  ;;  %s444_s6 = sshll.u32 %s267_s8, 4  ;;  %s1077_s30 = scalar_lea.hbm %s1143_s4, %s584_s9  ;;  %s1079_s6 = int_to_ptr.vmem [resolvable:$true] %s444_s6 }
  0x4e   : > { %423 = vperm.xlu1 %719, %v281_v11   ;;  %s429_s21 = scalar_lea.sflag [#allocation4], %s265_s28  ;;  %s750_s22 = scalar_lea.vmem %s1079_s6, 128 }
  0x4f   : > { %p751_p8 = scmp.ne.s32.totalorder %s1079_s6, %s750_s22  ;;  %s882_s5 = smov [#allocation5]  }
  0x50   : > { %601 = vmatmul.mubr.msk.f32.vlgmr.msra.gmra.mrb[0].mxu0 %vm287_vm1, %v280_v10  ;;  %s754_s10 = sshll.u32 %s882_s5, 4  ;;  %s755_s10 = int_to_ptr.vmem [resolvable:$false] %s754_s10 }
  0x51   : > { %p752_p4 = pnand %p751_p8, %p1154_p2  ;;  %s756_s29 = scalar_lea.vmem %s755_s10, 256 }
  0x52   : > { %p757_p1 = scmp.lt.s32.totalorder %s1079_s6, %s755_s10  ;;  %p758_p5 = scmp.lt.s32.totalorder %s756_s29, %s750_s22 }
  0x53   : > { %p753_p0 = pneg %p752_p4 }
  0x54   : > { %p759_p7 = por %p758_p5, %p757_p1 }
  0x56   : > { %p760_p3 = pnand %p759_p7, %p753_p0 }
  0xcb   : > { %v370_v16 = vpop.permute.xlu0 %369 }
  0xcc   : > { %vm371_vm2 = vcmp.eq.s32.totalorder %v367_v15, %v370_v16 }
  0xcd   : > { %v424_v52 = vpop.permute.xlu1 %423 }
 0x123   : > { %v357_v17 = vpop.f32.mrb[0].mxu0 }
 0x124   : > { %v576_v18 = vclamps-f32 %v357_v17, 1.0  ;;  %v602_v19 = vpop.f32.mrb[1].mxu0 }
 0x126   : > { %v372_v20 = vsel %vm371_vm2, %v576_v18, 0.0 }
 0x127   : > { %373 = vadd.xlane.f32.xlu0 %v372_v20 }
 0x1b4   : > { %v374_v21 = vpop.xlane.xlu0 %373 }
 0x1b5   : > { %vm380_vm3 = vcmp.le.f32.partialorder %v374_v21, 0.70710677  ;;  %vm384_vm4 = vcmp.le.f32.partialorder %v374_v21, 1.7948966e-09  ;;  %vm388_vm5 = vcmp.le.f32.partialorder %v374_v21, -0.70710677  ;;  %v375_v32 = vmul.f32 %v374_v21, %v374_v21 }
 0x1b6   : > { %v578_v22 = vsel %vm380_vm3, 1.0, %v880_v1  ;;  %v579_v23 = vsel %vm384_vm4, 1.0, %v880_v1  ;;  %vm392_vm6 = vcmp.le.f32.partialorder %v374_v21, -1.0  ;;  %v580_v25 = vsel %vm388_vm5, 1.0, %v880_v1 }
 0x1b7   : > { %v387_v24 = vadd.f32 %v579_v23, %v578_v22  ;;  %v581_v27 = vsel %vm392_vm6, 1.0, %v880_v1  ;;  %v376_v35 = vmul.f32 8.0, %v375_v32 }
 0x1b9   : > { %v391_v26 = vadd.f32 %v580_v25, %v387_v24  ;;  %v377_v39 = vmul.f32 %v376_v35, %v375_v32 }
 0x1bb   : > { %v395_v28 = vadd.f32 %v581_v27, %v391_v26  ;;  %v378_v42 = vsub.f32 %v377_v39, %v376_v35 }
 0x1bd   : > { %v396_v29 = vand.u32 2147483647, %v395_v28  ;;  %v405_v38 = vand.u32 2147483648, %v395_v28  ;;  %v379_v45 = vadd.f32 1.0, %v378_v42  ;;  %v415_v48 = vmul.f32 2.0, %v395_v28 }
 0x1bf   : > { %v398_v30 = vmul.f32 0.5, %v396_v29 }
 0x1c1   : > { %v399_v31 = vfloor.f32 %v398_v30 }
 0x1c3   : > { %v400_v33 = vmul.f32 2.0, %v399_v31 }
 0x1c5   : > { %v401_v34 = vsub.f32 %v396_v29, %v400_v33 }
 0x1c7   : > { %vm402_vm7 = vcmp.eq.f32.partialorder %v401_v34, 2.0 }
 0x1c8   : > { %v403_v36 = vsel %vm402_vm7, 0.0, %v401_v34 }
 0x1c9   : > { %v404_v37 = vand.u32 2147483647, %v403_v36 }
 0x1cb   : > { %v406_v40 = vor.u32 %v405_v38, %v404_v37 }
 0x1cd   : > { %vm407_vm8 = vcmp.ne.f32.partialorder %v406_v40, 0.0  ;;  %vm408_vm9 = vcmp.lt.f32.partialorder %v406_v40, 0.0  ;;  %v410_v41 = vadd.f32 2.0, %v406_v40 }
 0x1ce   : > { %vm409_vm10 = vmand %vm408_vm9, %vm407_vm8 }
 0x1cf   : > { %v411_v43 = vsel %vm409_vm10, %v410_v41, %v406_v40 }
 0x1d0   : > { %v412_v44 = vmul.f32 2.0, %v411_v43 }
 0x1d2   : > { %v413_v46 = vsub.f32 1.0, %v412_v44 }
 0x1d4   : > { %v414_v47 = vmul.f32 %v413_v46, %v379_v45 }
 0x1d6   : > { %v416_v49 = vsub.f32 %v414_v47, %v415_v48 }
 0x1d8   : > { %v417_v50 = vsub.f32 %v416_v49, %v374_v21 }
 0x1da   : > { %v418_v51 = vmul.f32 0.001118747, %v417_v50 }
 0x1dc   : > { %v419_v53 = vadd.f32 %v576_v18, %v418_v51 }
 0x1de   : > { %v420_v54 = vsel %vm371_vm2, %v419_v53, %v576_v18 }
 0x1df   : > { %v426_v55 = vmul.f32 %v424_v52, %v420_v54 }
 0x1e1   : > { %427 = vst [vmem:[%s267_s8] sm:$0xff] %v426_v55 }
 0x1e2   : > { %763 = shalt.err (!%p760_p3)
}
 0x1e3   : > { %s764_s28 = scalar_lea.hbm %s1077_s30, 128  ;;  %s768_s9 = scalar_lea.hbm %s1143_s4, 512 }
 0x1e4   : > { %p765_p10 = scmp.ne.s32.totalorder %s1077_s30, %s764_s28  ;;  %p769_p9 = scmp.lt.u32.totalorder %s1077_s30, %s1143_s4 }
 0x1e5   : > { %p770_p12 = scmp.lt.u32.totalorder %s768_s9, %s764_s28  ;;  %p772_p8 = scmp.lt.u32.totalorder %s764_s28, %s1077_s30 }
 0x1e6   : > { %p766_p11 = pnand %p765_p10, %p1154_p2 }
 0x1e7   : > { %p771_p13 = por %p770_p12, %p769_p9 }
 0x1e8   : > { %p767_p6 = pneg %p766_p11 }
 0x1e9   : > { %p773_p4 = por %p772_p8, %p771_p13 }
 0x1eb   : > { %p774_p0 = pnand %p773_p4, %p767_p6 }
 0x1ed   : > { %777 = shalt.err (!%p774_p0)
}
 0x1ee   : > { %611 = dma.vmem_to_hbm [thread:$0]  (%p1154_p2), %s1079_s6, 128, %s1077_s30, %s429_s21  }
 0x1ef PF: > { %p622_p1 = scmp.ge.s32.totalorder %s872_s25, 2  ;;  %s456_s18 = sand.u32 1, %s832_s15  }
 0x1f0   : > { %p1155_p5 = scmp.ne.s32.totalorder %s1152_s14, 0  ;;  %s457_s22 = scalar_lea.sflag [#allocation4], %s456_s18 }
 0x1f2   : > { %p618_p7 = pnand %p622_p1, %p1155_p5 }
 0x1f4   : > { %827 = dma.done.wait (!%p618_p7), %s457_s22, 128  }
 0x1f5   : > { %829 = vsyncadd (!%p618_p7), %s457_s22, 4294967168  ;;  %s20_s25 = sadd.s32 1, %s872_s25   ;;  %s1156_s13 = sld [smem:[#allocation8_spill]] }
 0x1f6   : > { %p17_p3 = scmp.ge.s32.totalorder %s20_s25, 6   ;;  %s1157_s6 = sld [smem:[#allocation9_spill]] }
 0x1f7   : > { %s1158_s15 = smov %s836_s16  ;;  %s1159_s16 = smov %s840_s17 }
 0x1f8   : > { %s1160_s17 = smov %s996_s12  ;;  %s1161_s18 = smov %s848_s19 }
 0x1f9   : > { %s1162_s19 = smov %s852_s20  ;;  %s1163_s20 = smov %s982_s7 }
 0x1fa   : > { %s1164_s21 = smov %s864_s23  ;;  %s1165_s22 = smov %s868_s24 }
 0x1fb   : > { %s1166_s23 = smov %s1156_s13  ;;  %19 = sbr.rel (!%p17_p3) target bundleno = 9 (0x9), region = 90 }
 0x1fc   : > { %s1167_s24 = smov %s1157_s6 }
 0x202   :  { %462 = vsyncpa [#allocation3], 1 }
 0x203   :  { %464 = vsyncpa [#allocation3 + $0x1], 1 }
 0x204   :  { %465 = vsyncpa [#allocation4], 1 }
 0x205   :  { %467 = vsyncpa [#allocation4 + $0x1], 1 }

</bundles_post_ra>
